<compile_context>
chip_gen: v7x
topology: tpu7x:2x2x1
jax: 0.10.0
libtpu: 0.0.40
codegen_flags: <defaults>
</compile_context>

<pallas_src>
import jax
import jax.numpy as jnp
from jax.experimental import pallas as pl
from jax.experimental.pallas import tpu as pltpu

LANES = 128   # vreg lane width == per-gate column block width


def _round_up(x: int, m: int) -> int:
    return ((x + m - 1) // m) * m


# ---------------------------------------------------------------------------
# Kernel: one grid step == one LSTM time step.
# ---------------------------------------------------------------------------
def _make_lstm_kernel(hidden_size: int, emb_size: int):
    H, E = hidden_size, emb_size
    bias_lane = E + H          # lane holding the constant 1 (folded biases)

    def kernel(x_ref, c0_ref, h0_ref, w_in_ref, w_hy_ref, y_ref, c_ref, h_ref):
        t = pl.program_id(0)

        # Load the initial state into the resident c/h output blocks once.
        @pl.when(t == 0)
        def _():
            c_ref[...] = c0_ref[...]
            h_ref[...] = h0_ref[...]

        # Fused row [ x_t | h_{t-1} | 1 | 0... ]: x at lanes [0:E], h at
        # lanes [E:E+H], bias-1 at lane E+H (supplied by the x slab).
        xh = x_ref[0] + h_ref[...]                               # (Bp, 128)

        # One fused MXU matmul for all four gates, biases folded in.
        gates = jnp.dot(xh, w_in_ref[...],
                        preferred_element_type=jnp.float32)      # (Bp, 512)

        # Gate order i, g, f, o; each gate's valid columns sit at lanes
        # [E:E+H] of its own 128-lane block -- the same home lanes as c/h,
        # so no cross-lane movement is needed anywhere.
        i = jax.nn.sigmoid(gates[:, 0 * LANES:1 * LANES])
        g = jnp.tanh(gates[:, 1 * LANES:2 * LANES])
        f = jax.nn.sigmoid(gates[:, 2 * LANES:3 * LANES])
        o = jax.nn.sigmoid(gates[:, 3 * LANES:4 * LANES])

        # Pad lanes stay exactly 0: pre-activations there are 0 so f,i,o=0.5,
        # g=0, and c is 0 there -> c_new = 0.5*0 + 0.5*0 = 0.
        c_new = f * c_ref[...] + i * g
        # Reference module: h = o * c (no tanh on the cell state).
        h_new = o * c_new

        # Output projection with B_y folded into w_hy's bias row: place a 1
        # on the bias lane (h_new is 0 there by construction).
        lane = jax.lax.broadcasted_iota(jnp.int32, h_new.shape, 1)
        h_aug = jnp.where(lane == bias_lane, 1.0, h_new)
        y_ref[0] = jnp.tanh(jnp.dot(h_aug, w_hy_ref[...],
                                    preferred_element_type=jnp.float32))

        # Carry the recurrent state in the resident output blocks (single HBM
        # writeback after the last grid step).
        c_ref[...] = c_new
        h_ref[...] = h_new

    return kernel


# ---------------------------------------------------------------------------
# Parameter construction (PyTorch layout) + one-time kernel-layout prep
# ---------------------------------------------------------------------------
def _xavier_normal(key, shape):
    # torch xavier_normal_ on (1, d_out, d_in) -- deterministic synthetic init.
    _, d_out, d_in = shape
    fan_in = d_out * d_in
    fan_out = 1 * d_in
    std = (2.0 / (fan_in + fan_out)) ** 0.5
    return std * jax.random.normal(key, shape, dtype=jnp.float32)


def make_params(key, hidden_size, emb_size):
    names = ["W_xi", "W_hi", "B_i", "W_xg", "W_hg", "B_g",
             "W_xf", "W_hf", "B_f", "W_xo", "W_ho", "B_o",
             "W_hy", "B_y"]
    shapes = {
        "W_xi": (1, hidden_size, emb_size), "W_hi": (1, hidden_size, hidden_size),
        "B_i": (1, hidden_size, 1),
        "W_xg": (1, hidden_size, emb_size), "W_hg": (1, hidden_size, hidden_size),
        "B_g": (1, hidden_size, 1),
        "W_xf": (1, hidden_size, emb_size), "W_hf": (1, hidden_size, hidden_size),
        "B_f": (1, hidden_size, 1),
        "W_xo": (1, hidden_size, emb_size), "W_ho": (1, hidden_size, hidden_size),
        "B_o": (1, hidden_size, 1),
        "W_hy": (1, emb_size, hidden_size), "B_y": (1, emb_size, 1),
    }
    keys = jax.random.split(key, len(names))
    return {n: _xavier_normal(k, shapes[n]) for n, k in zip(names, keys)}


def prepare_params(params, hidden_size, emb_size):
    """One-time re-layout: transpose, fuse x/h weights, fold biases, pad."""
    H, E = hidden_size, emb_size
    assert E + H + 1 <= LANES, "compact [x|h|1] layout needs E + H + 1 <= 128"

    def t(w):  # (1, out, in) -> (in, out)
        return jnp.transpose(w[0], (1, 0))

    # Fused input weight: K layout rows [0:E]=x, [E:E+H]=h, row E+H = bias.
    # Gate k's valid output columns are [k*128+E : k*128+E+H] (same home
    # lanes as c/h inside each 128-lane block).
    w_in = jnp.zeros((LANES, 4 * LANES), jnp.float32)
    for k, gate in enumerate(("i", "g", "f", "o")):
        c0 = k * LANES + E
        w_in = w_in.at[0:E, c0:c0 + H].set(t(params[f"W_x{gate}"]))
        w_in = w_in.at[E:E + H, c0:c0 + H].set(t(params[f"W_h{gate}"]))
        w_in = w_in.at[E + H, c0:c0 + H].set(params[f"B_{gate}"][0, :, 0])

    # Output projection: rows [E:E+H] = W_hy^T, bias row E+H = B_y.
    w_hy = jnp.zeros((LANES, LANES), jnp.float32)
    w_hy = w_hy.at[E:E + H, 0:E].set(t(params["W_hy"]))
    w_hy = w_hy.at[E + H, 0:E].set(params["B_y"][0, :, 0])

    return {"w_in": w_in, "w_hy": w_hy, "H": H, "E": E}


# ---------------------------------------------------------------------------
# Forward wrappers
# ---------------------------------------------------------------------------
def lstm_forward_seq(prepped, x_seq, c0, h0):
    """Run the LSTM over a sequence.

    x_seq: (T, B, E, 1), c0/h0: (B, H, 1)
    returns (y_seq (T, B, E, 1), c_T (B, H, 1), h_T (B, H, 1)).
    T = 1 reproduces the original single-step forward.
    """
    H, E = prepped["H"], prepped["E"]
    T, B = x_seq.shape[0], x_seq.shape[1]
    BP = _round_up(max(B, 1), 8)

    # One-time staging for the WHOLE sequence (nothing is staged per step).
    # x lanes [0:E], gate-bias 1 at lane E+H; h lanes [E:E+H] come from the
    # recurrent state inside the kernel.
    x_slab = jnp.zeros((T, BP, LANES), jnp.float32)
    x_slab = x_slab.at[:, 0:B, 0:E].set(x_seq[:, :, :, 0])
    x_slab = x_slab.at[:, :, E + H].set(1.0)

    c0_slab = jnp.zeros((BP, LANES), jnp.float32).at[0:B, E:E + H].set(c0[:, :, 0])
    h0_slab = jnp.zeros((BP, LANES), jnp.float32).at[0:B, E:E + H].set(h0[:, :, 0])

    kernel = _make_lstm_kernel(H, E)
    y_slab, c_out, h_out = pl.pallas_call(
        kernel,
        out_shape=(
            jax.ShapeDtypeStruct((T, BP, LANES), jnp.float32),   # y per step
            jax.ShapeDtypeStruct((BP, LANES), jnp.float32),      # final c
            jax.ShapeDtypeStruct((BP, LANES), jnp.float32),      # final h
        ),
        grid_spec=pltpu.PrefetchScalarGridSpec(
            num_scalar_prefetch=0,
            grid=(T,),
            in_specs=[
                pl.BlockSpec((1, BP, LANES), lambda t: (t, 0, 0)),    # x_t slab
                pl.BlockSpec((BP, LANES), lambda t: (0, 0)),          # c0 (resident)
                pl.BlockSpec((BP, LANES), lambda t: (0, 0)),          # h0 (resident)
                pl.BlockSpec((LANES, 4 * LANES), lambda t: (0, 0)),   # w_in (resident)
                pl.BlockSpec((LANES, LANES), lambda t: (0, 0)),       # w_hy (resident)
            ],
            out_specs=[
                pl.BlockSpec((1, BP, LANES), lambda t: (t, 0, 0)),    # y_t stream
                pl.BlockSpec((BP, LANES), lambda t: (0, 0)),          # c state
                pl.BlockSpec((BP, LANES), lambda t: (0, 0)),          # h state
            ],
        ),
        compiler_params=pltpu.CompilerParams(
            dimension_semantics=("arbitrary",)),   # recurrence => sequential
    )(x_slab, c0_slab, h0_slab, prepped["w_in"], prepped["w_hy"])

    y_seq = y_slab[:, 0:B, 0:E, None]
    c_T = c_out[0:B, E:E + H, None]
    h_T = h_out[0:B, E:E + H, None]
    return y_seq, c_T, h_T


def lstm_forward_ref(params, x, c, h):
    """Pure-JAX reference mirroring the PyTorch forward exactly (one step)."""
    i = jax.nn.sigmoid(params["W_xi"] @ x + params["W_hi"] @ h + params["B_i"])
    g = jnp.tanh(params["W_xg"] @ x + params["W_hg"] @ h + params["B_g"])
    f = jax.nn.sigmoid(params["W_xf"] @ x + params["W_hf"] @ h + params["B_f"])
    c_new = f * c + i * g
    o = jax.nn.sigmoid(params["W_xo"] @ x + params["W_ho"] @ h + params["B_o"])
    h_new = o * c_new
    y = jnp.tanh(params["W_hy"] @ h_new + params["B_y"])
    return y, c_new, h_new


if __name__ == "__main__":
    batch, hidden_size, emb_size, seq_len = 2, 32, 16, 8

    key = jax.random.PRNGKey(0)
    k_params, k_x = jax.random.split(key)
    params = make_params(k_params, hidden_size, emb_size)

    # One-time kernel-layout prep (hoisted out of the forward entirely).
    prepped = prepare_params(params, hidden_size, emb_size)

    x_seq = jax.random.normal(k_x, (seq_len, batch, emb_size, 1), dtype=jnp.float32)
    c0 = jnp.zeros((batch, hidden_size, 1), dtype=jnp.float32)
    h0 = jnp.zeros((batch, hidden_size, 1), dtype=jnp.float32)

    y_seq, c_T, h_T = lstm_forward_seq(prepped, x_seq, c0, h0)
    jax.block_until_ready((y_seq, c_T, h_T))

    # Reference: step the pure-JAX mirror of the PyTorch forward over time.
    c_ref, h_ref = c0, h0
    ys = []
    for t in range(seq_len):
        y_t, c_ref, h_ref = lstm_forward_ref(params, x_seq[t], c_ref, h_ref)
        ys.append(y_t)
    y_ref = jnp.stack(ys, axis=0)

    assert jnp.allclose(y_seq, y_ref, atol=5e-5), "y mismatch"
    assert jnp.allclose(c_T, c_ref, atol=5e-5), "c mismatch"
    assert jnp.allclose(h_T, h_ref, atol=5e-5), "h mismatch"

    print("KERNEL_OK")
</pallas_src>

<mosaic_0001>
module attributes {stable_mosaic.version = 11 : i64} {
  func.func @kernel(%arg0: i32, %arg1: memref<1x8x128xf32, #tpu.memory_space<vmem>>, %arg2: memref<8x128xf32, #tpu.memory_space<vmem>>, %arg3: memref<8x128xf32, #tpu.memory_space<vmem>>, %arg4: memref<128x512xf32, #tpu.memory_space<vmem>>, %arg5: memref<128x128xf32, #tpu.memory_space<vmem>>, %arg6: memref<1x8x128xf32, #tpu.memory_space<vmem>>, %arg7: memref<8x128xf32, #tpu.memory_space<vmem>>, %arg8: memref<8x128xf32, #tpu.memory_space<vmem>>) attributes {dimension_semantics = [#tpu.dimension_semantics<arbitrary>], iteration_bounds = array<i64: 8>, scalar_prefetch = 0 : i64, scratch_operands = 0 : i64, tpu.core_type = #tpu.core_type<tc>, window_params = [{transform_indices = @transform_0, window_bounds = array<i64: 1, 8, 128>}, {pipeline_mode = #tpu.pipeline_mode<synchronous>, transform_indices = @transform_1, window_bounds = array<i64: 8, 128>}, {pipeline_mode = #tpu.pipeline_mode<synchronous>, transform_indices = @transform_2, window_bounds = array<i64: 8, 128>}, {pipeline_mode = #tpu.pipeline_mode<synchronous>, transform_indices = @transform_3, window_bounds = array<i64: 128, 512>}, {pipeline_mode = #tpu.pipeline_mode<synchronous>, transform_indices = @transform_4, window_bounds = array<i64: 128, 128>}, {transform_indices = @transform_5, window_bounds = array<i64: 1, 8, 128>}, {pipeline_mode = #tpu.pipeline_mode<synchronous>, transform_indices = @transform_6, window_bounds = array<i64: 8, 128>}, {pipeline_mode = #tpu.pipeline_mode<synchronous>, transform_indices = @transform_7, window_bounds = array<i64: 8, 128>}]} {
    %c0_i32 = arith.constant 0 : i32
    %0 = arith.cmpi eq, %arg0, %c0_i32 : i32
    %1 = arith.extui %0 : i1 to i32
    %c0_i32_0 = arith.constant 0 : i32
    %2 = arith.cmpi ne, %1, %c0_i32_0 : i32
    scf.if %2 {
      %c0_23 = arith.constant 0 : index
      %c0_24 = arith.constant 0 : index
      %47 = vector.load %arg2[%c0_23, %c0_24] : memref<8x128xf32, #tpu.memory_space<vmem>>, vector<8x128xf32>
      %c0_25 = arith.constant 0 : index
      %c0_26 = arith.constant 0 : index
      %48 = vector.load %arg7[%c0_25, %c0_26] : memref<8x128xf32, #tpu.memory_space<vmem>>, vector<8x128xf32>
      tpu.vector_store %arg7[%c0_25, %c0_26], %47 {strides = array<i32>} : memref<8x128xf32, #tpu.memory_space<vmem>>, vector<8x128xf32>,
      %c0_27 = arith.constant 0 : index
      %c0_28 = arith.constant 0 : index
      %49 = vector.load %arg3[%c0_27, %c0_28] : memref<8x128xf32, #tpu.memory_space<vmem>>, vector<8x128xf32>
      %c0_29 = arith.constant 0 : index
      %c0_30 = arith.constant 0 : index
      %50 = vector.load %arg8[%c0_29, %c0_30] : memref<8x128xf32, #tpu.memory_space<vmem>>, vector<8x128xf32>
      tpu.vector_store %arg8[%c0_29, %c0_30], %49 {strides = array<i32>} : memref<8x128xf32, #tpu.memory_space<vmem>>, vector<8x128xf32>,
    } else {
    }
    %c0 = arith.constant 0 : index
    %c0_1 = arith.constant 0 : index
    %c0_2 = arith.constant 0 : index
    %3 = vector.load %arg1[%c0, %c0_1, %c0_2] : memref<1x8x128xf32, #tpu.memory_space<vmem>>, vector<1x8x128xf32>
    %4 = vector.shape_cast %3 : vector<1x8x128xf32> to vector<8x128xf32>
    %c0_3 = arith.constant 0 : index
    %c0_4 = arith.constant 0 : index
    %5 = vector.load %arg8[%c0_3, %c0_4] : memref<8x128xf32, #tpu.memory_space<vmem>>, vector<8x128xf32>
    %6 = arith.addf %4, %5 : vector<8x128xf32>
    %c0_5 = arith.constant 0 : index
    %c0_6 = arith.constant 0 : index
    %7 = vector.load %arg4[%c0_5, %c0_6] : memref<128x512xf32, #tpu.memory_space<vmem>>, vector<128x512xf32>
    %cst = arith.constant dense<0.000000e+00> : vector<8x512xf32>
    %8 = tpu.matmul %6, %7, %cst {dimension_numbers = #tpu.dot_dimension_numbers<[1], [0], [0], [1], [0, 0, 1, 1], [], []>} : vector<8x128xf32>, vector<128x512xf32>, vector<8x512xf32> -> vector<8x512xf32>
    %9 = vector.extract_strided_slice %8 {offsets = [0, 0], sizes = [8, 128], strides = [1, 1]} : vector<8x512xf32> to vector<8x128xf32>
    %10 = arith.negf %9 : vector<8x128xf32>
    %11 = math.exp %10 : vector<8x128xf32>
    %cst_7 = arith.constant 1.000000e+00 : f32
    %12 = vector.broadcast %cst_7 : f32 to vector<8x128xf32>
    %13 = arith.addf %12, %11 : vector<8x128xf32>
    %14 = arith.divf %12, %13 : vector<8x128xf32>
    %15 = vector.extract_strided_slice %8 {offsets = [0, 128], sizes = [8, 128], strides = [1, 1]} : vector<8x512xf32> to vector<8x128xf32>
    %16 = math.tanh %15 : vector<8x128xf32>
    %17 = vector.extract_strided_slice %8 {offsets = [0, 256], sizes = [8, 128], strides = [1, 1]} : vector<8x512xf32> to vector<8x128xf32>
    %18 = arith.negf %17 : vector<8x128xf32>
    %19 = math.exp %18 : vector<8x128xf32>
    %cst_8 = arith.constant 1.000000e+00 : f32
    %20 = vector.broadcast %cst_8 : f32 to vector<8x128xf32>
    %21 = arith.addf %20, %19 : vector<8x128xf32>
    %22 = arith.divf %20, %21 : vector<8x128xf32>
    %23 = vector.extract_strided_slice %8 {offsets = [0, 384], sizes = [8, 128], strides = [1, 1]} : vector<8x512xf32> to vector<8x128xf32>
    %24 = arith.negf %23 : vector<8x128xf32>
    %25 = math.exp %24 : vector<8x128xf32>
    %cst_9 = arith.constant 1.000000e+00 : f32
    %26 = vector.broadcast %cst_9 : f32 to vector<8x128xf32>
    %27 = arith.addf %26, %25 : vector<8x128xf32>
    %28 = arith.divf %26, %27 : vector<8x128xf32>
    %c0_10 = arith.constant 0 : index
    %c0_11 = arith.constant 0 : index
    %29 = vector.load %arg7[%c0_10, %c0_11] : memref<8x128xf32, #tpu.memory_space<vmem>>, vector<8x128xf32>
    %30 = arith.mulf %22, %29 : vector<8x128xf32>
    %31 = arith.mulf %14, %16 : vector<8x128xf32>
    %32 = arith.addf %30, %31 : vector<8x128xf32>
    %33 = arith.mulf %28, %32 : vector<8x128xf32>
    %34 = tpu.iota {dimensions = array<i32: 1>} : vector<8x128xi32>
    %c48_i32 = arith.constant 48 : i32
    %35 = vector.broadcast %c48_i32 : i32 to vector<8x128xi32>
    %36 = arith.cmpi eq, %34, %35 : vector<8x128xi32>
    %cst_12 = arith.constant 1.000000e+00 : f32
    %37 = vector.broadcast %cst_12 : f32 to vector<8x128xf32>
    %38 = arith.select %36, %37, %33 : vector<8x128xi1>, vector<8x128xf32>
    %c0_13 = arith.constant 0 : index
    %c0_14 = arith.constant 0 : index
    %39 = vector.load %arg5[%c0_13, %c0_14] : memref<128x128xf32, #tpu.memory_space<vmem>>, vector<128x128xf32>
    %cst_15 = arith.constant dense<0.000000e+00> : vector<8x128xf32>
    %40 = tpu.matmul %38, %39, %cst_15 {dimension_numbers = #tpu.dot_dimension_numbers<[1], [0], [0], [1], [0, 0, 1, 1], [], []>} : vector<8x128xf32>, vector<128x128xf32>, vector<8x128xf32> -> vector<8x128xf32>
    %41 = math.tanh %40 : vector<8x128xf32>
    %c0_16 = arith.constant 0 : index
    %c0_17 = arith.constant 0 : index
    %c0_18 = arith.constant 0 : index
    %42 = vector.load %arg6[%c0_16, %c0_17, %c0_18] : memref<1x8x128xf32, #tpu.memory_space<vmem>>, vector<1x8x128xf32>
    %43 = vector.shape_cast %42 : vector<1x8x128xf32> to vector<8x128xf32>
    %44 = vector.shape_cast %41 : vector<8x128xf32> to vector<1x8x128xf32>
    tpu.vector_store %arg6[%c0_16, %c0_17, %c0_18], %44 {strides = array<i32>} : memref<1x8x128xf32, #tpu.memory_space<vmem>>, vector<1x8x128xf32>,
    %c0_19 = arith.constant 0 : index
    %c0_20 = arith.constant 0 : index
    %45 = vector.load %arg7[%c0_19, %c0_20] : memref<8x128xf32, #tpu.memory_space<vmem>>, vector<8x128xf32>
    tpu.vector_store %arg7[%c0_19, %c0_20], %32 {strides = array<i32>} : memref<8x128xf32, #tpu.memory_space<vmem>>, vector<8x128xf32>,
    %c0_21 = arith.constant 0 : index
    %c0_22 = arith.constant 0 : index
    %46 = vector.load %arg8[%c0_21, %c0_22] : memref<8x128xf32, #tpu.memory_space<vmem>>, vector<8x128xf32>
    tpu.vector_store %arg8[%c0_21, %c0_22], %33 {strides = array<i32>} : memref<8x128xf32, #tpu.memory_space<vmem>>, vector<8x128xf32>,
    return
  }
  func.func @transform_0(%arg0: i32) -> (i32, i32, i32) {
    %c0_i32 = arith.constant 0 : i32
    %c0_i32_0 = arith.constant 0 : i32
    %c0_i32_1 = arith.constant 0 : i32
    return %arg0, %c0_i32, %c0_i32_0 : i32, i32, i32
  }
  func.func @transform_1(%arg0: i32) -> (i32, i32) {
    %c0_i32 = arith.constant 0 : i32
    %c0_i32_0 = arith.constant 0 : i32
    %c0_i32_1 = arith.constant 0 : i32
    return %c0_i32, %c0_i32_0 : i32, i32
  }
  func.func @transform_2(%arg0: i32) -> (i32, i32) {
    %c0_i32 = arith.constant 0 : i32
    %c0_i32_0 = arith.constant 0 : i32
    %c0_i32_1 = arith.constant 0 : i32
    return %c0_i32, %c0_i32_0 : i32, i32
  }
  func.func @transform_3(%arg0: i32) -> (i32, i32) {
    %c0_i32 = arith.constant 0 : i32
    %c0_i32_0 = arith.constant 0 : i32
    %c0_i32_1 = arith.constant 0 : i32
    return %c0_i32, %c0_i32_0 : i32, i32
  }
  func.func @transform_4(%arg0: i32) -> (i32, i32) {
    %c0_i32 = arith.constant 0 : i32
    %c0_i32_0 = arith.constant 0 : i32
    %c0_i32_1 = arith.constant 0 : i32
    return %c0_i32, %c0_i32_0 : i32, i32
  }
  func.func @transform_5(%arg0: i32) -> (i32, i32, i32) {
    %c0_i32 = arith.constant 0 : i32
    %c0_i32_0 = arith.constant 0 : i32
    %c0_i32_1 = arith.constant 0 : i32
    return %arg0, %c0_i32, %c0_i32_0 : i32, i32, i32
  }
  func.func @transform_6(%arg0: i32) -> (i32, i32) {
    %c0_i32 = arith.constant 0 : i32
    %c0_i32_0 = arith.constant 0 : i32
    %c0_i32_1 = arith.constant 0 : i32
    return %c0_i32, %c0_i32_0 : i32, i32
  }
  func.func @transform_7(%arg0: i32) -> (i32, i32) {
    %c0_i32 = arith.constant 0 : i32
    %c0_i32_0 = arith.constant 0 : i32
    %c0_i32_1 = arith.constant 0 : i32
    return %c0_i32, %c0_i32_0 : i32, i32
  }
}

</mosaic_0001>

<bundles_post_ra>
// kernel: tpu_custom_call.1
= control target key start
LH: loop header
LB: loop body
LE: loop exit
PB: predicated region body
PF: predicated region fallthrough
CT: control target
= control target key end

     0   :  { %13 = vsyncpa [#allocation3], 0  ;;  %s1791_s0 = inlined_call_operand.hbm [shape: f32[8,8,128], index: 0, kind: input, shape index: {}]   ;;  %s1792_s1 = inlined_call_operand.hbm [shape: f32[8,128], index: 1, kind: input, shape index: {}]   ;;  %s1793_s2 = inlined_call_operand.hbm [shape: f32[8,128], index: 2, kind: input, shape index: {}]   ;;  %s1794_s3 = inlined_call_operand.hbm [shape: f32[128,512], index: 3, kind: input, shape index: {}]   ;;  %s1795_s4 = inlined_call_operand.hbm [shape: f32[128,128], index: 4, kind: input, shape index: {}]   ;;  %s1796_s5 = inlined_call_operand.hbm [shape: f32[8,8,128], index: 5, kind: output, shape index: {0}]   ;;  %s1797_s6 = inlined_call_operand.hbm [shape: f32[8,128], index: 6, kind: output, shape index: {1}]   ;;  %s1798_s7 = inlined_call_operand.hbm [shape: f32[8,128], index: 7, kind: output, shape index: {2}]  }
   0x1   :  { %15 = vsyncpa [#allocation3 + $0x1], 0 }
   0x2   :  { %16 = vsyncpa [#allocation6], 0 }
   0x3   :  { %17 = vsyncpa [#allocation9], 0 }
   0x4   :  { %18 = vsyncpa [#allocation4], 0 }
   0x5   :  { %20 = vsyncpa [#allocation4 + $0x1], 0 }
   0x6   :  { %21 = vsyncpa [#allocation13], 0  ;;  %s1465_s24 = smov 0   ;;  %s1467_s25 = smov 0  }
   0x7   :  { %s1469_s26 = smov 0   ;;  %s1471_s27 = smov 0  }
   0x8 LB: > { %s1410_s28 = smov [#allocation5]   ;;  %s1486_s30 = sadd.s32 4294967295, %s1408_s27   ;;  %s1408_s27 = sphi %s1471_s27, %s1831_s27   ;;  %s1404_s26 = sphi %s1469_s26, %s1830_s26   ;;  %s1400_s25 = sphi %s1467_s25, %s1829_s25   ;;  %s1396_s24 = sphi %s1465_s24, %s1828_s24  }
   0x9   : > { %s223_s29 = sshll.u32 %s1410_s28, 4  ;;  %p845_p0 = scmp.ge.s32.totalorder %s1408_s27, 1  ;;  %s224_s29 = int_to_ptr.vmem [resolvable:$true] %s223_s29 }
   0xa   : > { %p1799_p1 = scmp.eq.s32.totalorder %s1486_s30, 0  ;;  %p210_p2 = scmp.lt.s32.totalorder %s1408_s27, 9 }
   0xb   : > { %s1411_s9 = smov [#allocation8]   ;;  %s1412_s12 = smov [#allocation7]  }
   0xc   : > { %p1492_p4 = pnand %p845_p0, %p210_p2  ;;  %s244_s10 = sshll.u32 %s1411_s9, 4  ;;  %s1498_s10 = int_to_ptr.vmem [resolvable:$true] %s244_s10 }
   0xd   : > { %s234_s13 = sshll.u32 %s1412_s12, 4  ;;  %s1136_s16 = scalar_lea.hbm %s1792_s1, 128  ;;  %s1506_s13 = int_to_ptr.vmem [resolvable:$true] %s234_s13 }
   0xe   : > { %s1803_s8 = scalar_select %p1492_p4, 1, 0 }
   0xf   : > { %p1040_p5 = pneg %p1492_p4  ;;  %p1137_p7 = scmp.ne.s32.totalorder %s1792_s1, %s1136_s16 }
  0x10   : > { %p1143_p11 = scmp.lt.u32.totalorder %s1136_s16, %s1792_s1 }
  0x11   : > { %p1502_p6 = pnand %p1040_p5, %p1799_p1 }
  0x13   : > { %p1516_p8 = pneg %p1502_p6 }
  0x15   : > { %p1139_p9 = pnand %p1516_p8, %p1137_p7 }
  0x17   : > { %p1140_p10 = pneg %p1139_p9 }
  0x19   : > { %p1145_p12 = pnand %p1143_p11, %p1140_p10 }
  0x1b   : > { %1148 = shalt.err (!%p1145_p12)
}
  0x1c   : > { %s1149_s22 = scalar_lea.vmem %s224_s29, 128  ;;  %p1157_p5 = scmp.lt.s32.totalorder %s224_s29, %s224_s29 }
  0x1d   : > { %p1150_p13 = scmp.ne.s32.totalorder %s224_s29, %s1149_s22  ;;  %p1158_p3 = scmp.lt.s32.totalorder %s1149_s22, %s1149_s22 }
  0x1f   : > { %p1152_p0 = pnand %p1150_p13, %p1516_p8  ;;  %p1159_p1 = por %p1158_p3, %p1157_p5 }
  0x21   : > { %p1153_p2 = pneg %p1152_p0 }
  0x23   : > { %p1160_p4 = pnand %p1159_p1, %p1153_p2 }
  0x25   : > { %1163 = shalt.err (!%p1160_p4)
}
  0x26   : > { %1043 = dma.hbm_to_vmem [thread:$0]  (!%p1502_p6), %s1792_s1, 128, %s224_s29, [#allocation6]  }
  0x27   : > { %s1164_s14 = scalar_lea.hbm %s1794_s3, 8192 }
  0x28   : > { %p1165_p7 = scmp.ne.s32.totalorder %s1794_s3, %s1164_s14  ;;  %p1171_p1 = scmp.lt.u32.totalorder %s1164_s14, %s1794_s3 }
  0x2a   : > { %p1167_p9 = pnand %p1165_p7, %p1516_p8 }
  0x2c   : > { %p1168_p3 = pneg %p1167_p9 }
  0x2e   : > { %p1173_p4 = pnand %p1171_p1, %p1168_p3 }
  0x30   : > { %1176 = shalt.err (!%p1173_p4)
}
  0x31   : > { %s1177_s29 = scalar_lea.vmem %s1498_s10, 8192  ;;  %p1185_p13 = scmp.lt.s32.totalorder %s1498_s10, %s1498_s10 }
  0x32   : > { %p1178_p10 = scmp.ne.s32.totalorder %s1498_s10, %s1177_s29  ;;  %p1186_p0 = scmp.lt.s32.totalorder %s1177_s29, %s1177_s29 }
  0x34   : > { %p1180_p11 = pnand %p1178_p10, %p1516_p8  ;;  %p1187_p2 = por %p1186_p0, %p1185_p13 }
  0x36   : > { %p1181_p12 = pneg %p1180_p11 }
  0x38   : > { %p1188_p5 = pnand %p1187_p2, %p1181_p12 }
  0x3a   : > { %1191 = shalt.err (!%p1188_p5)
}
  0x3b   : > { %s1413_s20 = smov 512   ;;  %s1414_s21 = smov 32  }
  0x3c   : > { %1049 = dma.hbm_to_vmem [thread:$0]  (!%p1502_p6), %s1794_s3, 8192, %s1498_s10, [#allocation9], %s1413_s20, %s1413_s20, %s1414_s21  }
  0x3d   : > { %s1192_s12 = scalar_lea.hbm %s1793_s2, 128 }
  0x3e   : > { %p1193_p7 = scmp.ne.s32.totalorder %s1793_s2, %s1192_s12  ;;  %p1199_p1 = scmp.lt.u32.totalorder %s1192_s12, %s1793_s2 }
  0x40   : > { %p1195_p9 = pnand %p1193_p7, %p1516_p8 }
  0x42   : > { %p1196_p3 = pneg %p1195_p9 }
  0x44   : > { %p1201_p4 = pnand %p1199_p1, %p1196_p3 }
  0x46   : > { %1204 = shalt.err (!%p1201_p4)
}
  0x47   : > { %s1205_s10 = scalar_lea.vmem %s1506_s13, 128  ;;  %p1213_p13 = scmp.lt.s32.totalorder %s1506_s13, %s1506_s13 }
  0x48   : > { %p1206_p10 = scmp.ne.s32.totalorder %s1506_s13, %s1205_s10  ;;  %p1214_p0 = scmp.lt.s32.totalorder %s1205_s10, %s1205_s10 }
  0x4a   : > { %p1208_p11 = pnand %p1206_p10, %p1516_p8  ;;  %p1215_p2 = por %p1214_p0, %p1213_p13 }
  0x4c   : > { %p1209_p12 = pneg %p1208_p11 }
  0x4e   : > { %p1216_p5 = pnand %p1215_p2, %p1209_p12 }
  0x50   : > { %1219 = shalt.err (!%p1216_p5)
}
  0x51   : > { %1046 = dma.hbm_to_vmem [thread:$0]  (!%p1502_p6), %s1793_s2, 128, %s1506_s13, [#allocation6]  }
  0x52   : > { %s1415_s20 = smov [#allocation10]   ;;  %s1220_s28 = scalar_lea.hbm %s1795_s4, 2048 }
  0x53   : > { %s257_s21 = sshll.u32 %s1415_s20, 4  ;;  %p1221_p7 = scmp.ne.s32.totalorder %s1795_s4, %s1220_s28  ;;  %s258_s21 = int_to_ptr.vmem [resolvable:$true] %s257_s21 }
  0x54   : > { %p1227_p1 = scmp.lt.u32.totalorder %s1220_s28, %s1795_s4 }
  0x55   : > { %p1223_p9 = pnand %p1221_p7, %p1516_p8 }
  0x57   : > { %p1224_p3 = pneg %p1223_p9 }
  0x59   : > { %p1229_p4 = pnand %p1227_p1, %p1224_p3 }
  0x5b   : > { %1232 = shalt.err (!%p1229_p4)
}
  0x5c   : > { %s1233_s13 = scalar_lea.vmem %s258_s21, 2048  ;;  %p1241_p13 = scmp.lt.s32.totalorder %s258_s21, %s258_s21 }
  0x5d   : > { %p1234_p10 = scmp.ne.s32.totalorder %s258_s21, %s1233_s13  ;;  %p1242_p0 = scmp.lt.s32.totalorder %s1233_s13, %s1233_s13 }
  0x5f   : > { %p1236_p11 = pnand %p1234_p10, %p1516_p8  ;;  %p1243_p2 = por %p1242_p0, %p1241_p13 }
  0x61   : > { %p1237_p12 = pneg %p1236_p11 }
  0x63   : > { %p1244_p5 = pnand %p1243_p2, %p1237_p12 }
  0x65   : > { %1247 = shalt.err (!%p1244_p5)
}
  0x66   : > { %s1416_s16 = smov 128   ;;  %s1417_s19 = smov 8  }
  0x67   : > { %1052 = dma.hbm_to_vmem [thread:$0]  (!%p1502_p6), %s1795_s4, 2048, %s258_s21, [#allocation9], %s1416_s16, %s1416_s16, %s1417_s19  }
  0x68   : > { %s844_s18 = sadd.s32 4294967294, %s1408_s27   ;;  %s1598_s29 = sadd.s32 1, %s1408_s27  }
  0x69   : > { %s31_s20 = ssub.s32 %s1408_s27, %s1598_s29  ;;  %s34_s22 = sadd.s32 1, %s1404_s26 }
  0x6a   : > { %p32_p8 = scmp.eq.s32.totalorder %s31_s20, 0  ;;  %p41_p7 = scmp.ne.s32.totalorder %s1404_s26, %s1400_s25 }
  0x6b   : > { %p42_p9 = scmp.eq.s32.totalorder %s1408_s27, 0  ;;  %p47_p3 = scmp.ne.s32.totalorder %s1400_s25, %s1396_s24 }
  0x6c   : > { %s1609_s23 = scalar_select %p32_p8, %s1404_s26, %s34_s22  }
  0x6d   : > { %p1611_p1 = por %p42_p9, %p41_p7  ;;  %p1807_p4 = scmp.eq.s32.totalorder %s1486_s30, 0 }
  0x6e   : > { %p1801_p10 = scmp.eq.s32.totalorder %s1486_s30, 7  ;;  %p161_p11 = scmp.eq.s32.totalorder %s844_s18, 7 }
  0x6f   : > { %p1617_p6 = por %p1807_p4, %p47_p3  ;;  %p1065_p12 = scmp.lt.s32.totalorder %s1408_s27, 8 }
  0x70   : > { %s271_s28 = sand.u32 1, %s1404_s26   ;;  %p1626_p13 = por %p1801_p10, %p41_p7 }
  0x71   : > { %p1630_p0 = por %p161_p11, %p47_p3  ;;  %s851_s14 = sshll.u32 %s271_s28, 3 }
  0x72   : > { %s1809_s9 = scalar_select %p1626_p13, 1, 0 }
  0x73   : > { %s1810_s12 = scalar_select %p1630_p0, 1, 0 }
  0x74   : > { %s852_s15 = sshll.u32 %s1408_s27, 7  ;;  %s275_s17 = scalar_lea.vmem [#allocation2], %s851_s14 }
  0x75   : > { %s1638_s19 = scalar_lea.hbm %s1791_s0, %s852_s15  ;;  %s282_s10 = sshll.u32 %s275_s17, 4  ;;  %s1640_s10 = int_to_ptr.vmem [resolvable:$true] %s282_s10 }
  0x76   : > { %p1644_p2 = pnand %p1065_p12, %p1611_p1  ;;  %s272_s20 = scalar_lea.sflag [#allocation3], %s271_s28 }
  0x77   : > { %s1248_s22 = scalar_lea.hbm %s1638_s19, 128  ;;  %s1253_s13 = scalar_lea.hbm %s1791_s0, 1024 }
  0x78   : > { %p1249_p5 = scmp.ne.s32.totalorder %s1638_s19, %s1248_s22  ;;  %p1250_p8 = pneg %p1644_p2 }
  0x79   : > { %p1254_p3 = scmp.lt.u32.totalorder %s1638_s19, %s1791_s0  ;;  %p1255_p1 = scmp.lt.u32.totalorder %s1253_s13, %s1248_s22 }
  0x7a   : > { %p1251_p7 = pnand %p1250_p8, %p1249_p5  ;;  %p1257_p11 = scmp.lt.u32.totalorder %s1248_s22, %s1638_s19 }
  0x7b   : > { %p1256_p4 = por %p1255_p1, %p1254_p3 }
  0x7c   : > { %p1252_p9 = pneg %p1251_p7 }
  0x7d   : > { %p1258_p12 = por %p1257_p11, %p1256_p4 }
  0x7f   : > { %p1259_p10 = pnand %p1258_p12, %p1252_p9 }
  0x81   : > { %1262 = shalt.err (!%p1259_p10)
}
  0x82   : > { %s1263_s28 = scalar_lea.vmem %s1640_s10, 128  ;;  %s1418_s17 = smov [#allocation2]  }
  0x83   : > { %p1264_p5 = scmp.ne.s32.totalorder %s1640_s10, %s1263_s28  ;;  %s1268_s14 = sshll.u32 %s1418_s17, 4  ;;  %s1269_s14 = int_to_ptr.vmem [resolvable:$false] %s1268_s14 }
  0x84   : > { %s1270_s15 = scalar_lea.vmem %s1269_s14, 256  ;;  %p1271_p13 = scmp.lt.s32.totalorder %s1640_s10, %s1269_s14 }
  0x85   : > { %p1266_p7 = pnand %p1264_p5, %p1250_p8  ;;  %p1272_p3 = scmp.lt.s32.totalorder %s1270_s15, %s1263_s28 }
  0x87   : > { %p1267_p0 = pneg %p1266_p7  ;;  %p1273_p1 = por %p1272_p3, %p1271_p13 }
  0x89   : > { %p1274_p4 = pnand %p1273_p1, %p1267_p0 }
  0x8b   : > { %1277 = shalt.err (!%p1274_p4)
}
  0x8c   : > { %1056 = dma.hbm_to_vmem [thread:$0]  (!%p1644_p2), %s1638_s19, 128, %s1640_s10, %s272_s20  }
  0x8d   : > { %p1812_p10 = scmp.ne.s32.totalorder %s1803_s8, 0 }
  0x8e   : > { %s1676_s22 = sand.u32 (!%p1812_p10), 1, %s1400_s25  }
  0x8f   : > { %291 = sbr.rel (%p1812_p10) target bundleno = 691 (0x2b3), region = 40  ;;  %s854_s13 = sshll.u32 (!%p1812_p10), %s1676_s22, 3 }
  0x90   : > { %s294_s11 = scalar_lea.sflag (!%p1812_p10), [#allocation3], %s1676_s22  ;;  %s1680_s16 = scalar_lea.vmem (!%p1812_p10), [#allocation2], %s854_s13 }
  0x96   : > { %1375 = dma.done.wait (%p1617_p6), %s294_s11, 128  }
  0x97   : > { %1377 = vsyncadd (%p1617_p6), %s294_s11, 4294967168  ;;  %p1813_p13 = scmp.eq.s32.totalorder %s1486_s30, 0 }
  0x99   : > { %1379 = dma.done.wait (%p1813_p13), [#allocation6], 256   ;;  %p1814_p0 = pmov %p1813_p13 }
  0x9b   : > { %1381 = vsyncadd (%p1814_p0), [#allocation6], 4294967040  ;;  %p1815_p2 = pmov %p1814_p0 }
  0x9c   : > { %p1816_p8 = pmov %p1814_p0 }
  0x9d   : > { %1383 = dma.done.wait (%p1815_p2), [#allocation9], 10240  }
  0x9e   : > { %1385 = vsyncadd (%p1816_p8), [#allocation9], 4294957056  ;;  %s1694_s8 = scalar_lea.vmem [#allocation11], %s854_s13  ;;  %p1817_p9 = scmp.ne.s32.totalorder %s1486_s30, 0 }
  0x9f   : > { %v348_v0 = vld [vmem:[#allocation5] sm:$0xff] (!%p1817_p9)  ;;  %v350_v1 = vld [vmem:[#allocation7] sm:$0xff] (!%p1817_p9) }
  0xa0   : > { %347 = sbr.rel (%p1817_p9) target bundleno = 167 (0xa7), region = 64  ;;  %349 = vst [vmem:[#allocation12] sm:$0xff] (!%p1817_p9), %v348_v0  ;;  %351 = vst [vmem:[#allocation14] sm:$0xff] (!%p1817_p9), %v350_v1 }
  0xa7 PF: > { %v356_v2 = vld [vmem:[#allocation8 + $0x8] sm:$0xff]  ;;  %v358_v4 = vld [vmem:[#allocation8 + $0x18] sm:$0xff]  ;;  %v355_v7 = vld [vmem:[#allocation8] sm:$0xff]  ;;  %v1419_v9 = vmov 0.0   ;;  %vm1421_vm0 = vmmov 0   ;;  %s1422_s21 = smov [#allocation12]  }
  0xa8   : > { %v360_v3 = vld [vmem:[#allocation8 + $0x28] sm:$0xff]  ;;  %v362_v6 = vld [vmem:[#allocation8 + $0x38] sm:$0xff]  ;;  %v359_v8 = vld [vmem:[#allocation8 + $0x20] sm:$0xff]  ;;  %483 = vmatprep.mubr.f32.mxu0 %v1419_v9  ;;  %554 = vmatprep.mubr.f32.mxu1 %v1419_v9  ;;  %s704_s19 = sshll.u32 %s1422_s21, 4  ;;  %p1818_p11 = scmp.eq.s32.totalorder %s1486_s30, 7  ;;  %s705_s19 = int_to_ptr.vmem [resolvable:$true] %s704_s19 }
  0xa9   : > { %v924_v5 = vpack.c.bf16 %v360_v3, %v356_v2  ;;  %v956_v10 = vpack.c.bf16 %v362_v6, %v358_v4  ;;  %v926_v11 = vpack.c.bf16 %v359_v8, %v355_v7  ;;  %v357_v12 = vld [vmem:[#allocation8 + $0x10] sm:$0xff]  ;;  %v364_v14 = vld [vmem:[#allocation8 + $0x48] sm:$0xff]  ;;  %v366_v17 = vld [vmem:[#allocation8 + $0x58] sm:$0xff]  ;;  %s1278_s10 = scalar_lea.vmem %s705_s19, 128  ;;  %p1285_p7 = scmp.lt.s32.totalorder %s705_s19, %s705_s19 }
  0xaa   : > { %v361_v13 = vld [vmem:[#allocation8 + $0x30] sm:$0xff]  ;;  %v368_v16 = vld [vmem:[#allocation8 + $0x68] sm:$0xff]  ;;  %v370_v18 = vld [vmem:[#allocation8 + $0x78] sm:$0xff]  ;;  %p1279_p6 = scmp.ne.s32.totalorder %s705_s19, %s1278_s10  ;;  %p1286_p3 = scmp.lt.s32.totalorder %s1278_s10, %s1278_s10 }
  0xab   : > { %925 = vmatprep.subr.bf16.mxu0 %v924_v5  ;;  %v958_v15 = vpack.c.bf16 %v361_v13, %v357_v12  ;;  %957 = vmatprep.subr.bf16.mxu1 %v956_v10  ;;  %v928_v19 = vpack.c.bf16 %v368_v16, %v364_v14  ;;  %v960_v20 = vpack.c.bf16 %v370_v18, %v366_v17  ;;  %v363_v21 = vld [vmem:[#allocation8 + $0x40] sm:$0xff]  ;;  %v365_v23 = vld [vmem:[#allocation8 + $0x50] sm:$0xff]  ;;  %v372_v26 = vld [vmem:[#allocation8 + $0x88] sm:$0xff] }
  0xac   : > { %927 = vmatpush1.bf16.msra.mxu0 %v926_v11  ;;  %v367_v22 = vld [vmem:[#allocation8 + $0x60] sm:$0xff]  ;;  %v369_v25 = vld [vmem:[#allocation8 + $0x70] sm:$0xff]  ;;  %v376_v27 = vld [vmem:[#allocation8 + $0xa8] sm:$0xff]  ;;  %p1280_p12 = pnand %p1279_p6, %p1818_p11  ;;  %p1287_p1 = por %p1286_p3, %p1285_p7 }
  0xad   : > { %959 = vmatpush1.bf16.msra.mxu1 %v958_v15  ;;  %v930_v24 = vpack.c.bf16 %v367_v22, %v363_v21  ;;  %929 = vmatprep.subr.bf16.mxu0 %v928_v19  ;;  %v962_v28 = vpack.c.bf16 %v369_v25, %v365_v23  ;;  %v932_v29 = vpack.c.bf16 %v376_v27, %v372_v26  ;;  %v374_v30 = vld [vmem:[#allocation8 + $0x98] sm:$0xff]  ;;  %v371_v32 = vld [vmem:[#allocation8 + $0x80] sm:$0xff]  ;;  %v373_v35 = vld [vmem:[#allocation8 + $0x90] sm:$0xff] }
  0xae   : > { %961 = vmatprep.subr.bf16.mxu1 %v960_v20  ;;  %v378_v31 = vld [vmem:[#allocation8 + $0xb8] sm:$0xff]  ;;  %v375_v34 = vld [vmem:[#allocation8 + $0xa0] sm:$0xff]  ;;  %v377_v36 = vld [vmem:[#allocation8 + $0xb0] sm:$0xff]  ;;  %p1281_p5 = pneg %p1280_p12 }
  0xaf   : > { %v964_v33 = vpack.c.bf16 %v378_v31, %v374_v30  ;;  %v934_v37 = vpack.c.bf16 %v375_v34, %v371_v32  ;;  %v380_v38 = vld [vmem:[#allocation8 + $0xc8] sm:$0xff]  ;;  %v382_v40 = vld [vmem:[#allocation8 + $0xd8] sm:$0xff]  ;;  %v966_v41 = vpack.c.bf16 %v377_v36, %v373_v35  ;;  %v379_v44 = vld [vmem:[#allocation8 + $0xc0] sm:$0xff] }
  0xb0   : > { %931 = vmatpush1.bf16.msra.mxu0 %v930_v24  ;;  %v384_v39 = vld [vmem:[#allocation8 + $0xe8] sm:$0xff]  ;;  %v386_v43 = vld [vmem:[#allocation8 + $0xf8] sm:$0xff]  ;;  %v383_v45 = vld [vmem:[#allocation8 + $0xe0] sm:$0xff]  ;;  %p1288_p4 = pnand %p1287_p1, %p1281_p5 }
  0xb1   : > { %963 = vmatpush1.bf16.msra.mxu1 %v962_v28  ;;  %933 = vmatprep.subr.bf16.mxu0 %v932_v29  ;;  %v936_v42 = vpack.c.bf16 %v384_v39, %v380_v38  ;;  %v968_v46 = vpack.c.bf16 %v386_v43, %v382_v40  ;;  %v381_v47 = vld [vmem:[#allocation8 + $0xd0] sm:$0xff]  ;;  %v388_v49 = vld [vmem:[#allocation8 + $0x108] sm:$0xff]  ;;  %v390_v51 = vld [vmem:[#allocation8 + $0x118] sm:$0xff]  ;;  %v938_v53 = vpack.c.bf16 %v383_v45, %v379_v44 }
  0xb2   : > { %965 = vmatprep.subr.bf16.mxu1 %v964_v33  ;;  %v385_v48 = vld [vmem:[#allocation8 + $0xf0] sm:$0xff]  ;;  %v392_v50 = vld [vmem:[#allocation8 + $0x128] sm:$0xff]  ;;  %v394_v52 = vld [vmem:[#allocation8 + $0x138] sm:$0xff] }
  0xb3   : > { %v970_v54 = vpack.c.bf16 %v385_v48, %v381_v47  ;;  %v940_v55 = vpack.c.bf16 %v392_v50, %v388_v49  ;;  %v387_v56 = vld [vmem:[#allocation8 + $0x100] sm:$0xff]  ;;  %v389_v58 = vld [vmem:[#allocation8 + $0x110] sm:$0xff]  ;;  %v972_v59 = vpack.c.bf16 %v394_v52, %v390_v51  ;;  %v396_v61 = vld [vmem:[#allocation8 + $0x148] sm:$0xff] }
  0xb4   : > { %935 = vmatpush1.bf16.msra.mxu0 %v934_v37  ;;  %v391_v57 = vld [vmem:[#allocation8 + $0x120] sm:$0xff]  ;;  %v393_v60 = vld [vmem:[#allocation8 + $0x130] sm:$0xff]  ;;  %v400_v62 = vld [vmem:[#allocation8 + $0x168] sm:$0xff] }
  0xb5   : > { %967 = vmatpush1.bf16.msra.mxu1 %v966_v41  ;;  %937 = vmatprep.subr.bf16.mxu0 %v936_v42  ;;  %v398_v63 = vld [vmem:[#allocation8 + $0x158] sm:$0xff]  ;;  %v942_v1 = vpack.c.bf16 %v391_v57, %v387_v56  ;;  %v974_v2 = vpack.c.bf16 %v393_v60, %v389_v58  ;;  %v944_v3 = vpack.c.bf16 %v400_v62, %v396_v61  ;;  %v395_v4 = vld [vmem:[#allocation8 + $0x140] sm:$0xff]  ;;  %v397_v6 = vld [vmem:[#allocation8 + $0x150] sm:$0xff]  ;;  %v1420_v42 = vmov 0.0|0.0  }
  0xb6   : > { %969 = vmatprep.subr.bf16.mxu1 %v968_v46  ;;  %v402_v0 = vld [vmem:[#allocation8 + $0x178] sm:$0xff]  ;;  %v399_v5 = vld [vmem:[#allocation8 + $0x160] sm:$0xff]  ;;  %v401_v8 = vld [vmem:[#allocation8 + $0x170] sm:$0xff] }
  0xb7   : > { %v976_v7 = vpack.c.bf16 %v402_v0, %v398_v63  ;;  %v404_v10 = vld [vmem:[#allocation8 + $0x188] sm:$0xff]  ;;  %v406_v12 = vld [vmem:[#allocation8 + $0x198] sm:$0xff]  ;;  %v946_v14 = vpack.c.bf16 %v399_v5, %v395_v4  ;;  %v978_v15 = vpack.c.bf16 %v401_v8, %v397_v6  ;;  %v403_v17 = vld [vmem:[#allocation8 + $0x180] sm:$0xff] }
  0xb8   : > { %939 = vmatpush1.bf16.msra.mxu0 %v938_v53  ;;  %v408_v11 = vld [vmem:[#allocation8 + $0x1a8] sm:$0xff]  ;;  %v410_v13 = vld [vmem:[#allocation8 + $0x1b8] sm:$0xff]  ;;  %v407_v18 = vld [vmem:[#allocation8 + $0x1a0] sm:$0xff] }
  0xb9   : > { %971 = vmatpush1.bf16.msra.mxu1 %v970_v54  ;;  %941 = vmatprep.subr.bf16.mxu0 %v940_v55  ;;  %v948_v16 = vpack.c.bf16 %v408_v11, %v404_v10  ;;  %v405_v19 = vld [vmem:[#allocation8 + $0x190] sm:$0xff]  ;;  %v980_v20 = vpack.c.bf16 %v410_v13, %v406_v12  ;;  %v412_v22 = vld [vmem:[#allocation8 + $0x1c8] sm:$0xff]  ;;  %v414_v24 = vld [vmem:[#allocation8 + $0x1d8] sm:$0xff]  ;;  %v950_v26 = vpack.c.bf16 %v407_v18, %v403_v17  ;;  %v585_v13 = vlaneseq }
  0xba   : > { %973 = vmatprep.subr.bf16.mxu1 %v972_v59  ;;  %v409_v21 = vld [vmem:[#allocation8 + $0x1b0] sm:$0xff]  ;;  %v416_v23 = vld [vmem:[#allocation8 + $0x1e8] sm:$0xff]  ;;  %v418_v25 = vld [vmem:[#allocation8 + $0x1f8] sm:$0xff] }
  0xbb   : > { %v982_v27 = vpack.c.bf16 %v409_v21, %v405_v19  ;;  %v952_v28 = vpack.c.bf16 %v416_v23, %v412_v22  ;;  %v411_v29 = vld [vmem:[#allocation8 + $0x1c0] sm:$0xff]  ;;  %v984_v31 = vpack.c.bf16 %v418_v25, %v414_v24  ;;  %v413_v32 = vld [vmem:[#allocation8 + $0x1d0] sm:$0xff]  ;;  %v353_v36 = vld [vmem:[#allocation14] sm:$0xff]  ;;  %v586_v19 = vand.u32 127, %v585_v13 }
  0xbc   : > { %943 = vmatpush1.bf16.msra.mxu0 %v942_v1  ;;  %v415_v30 = vld [vmem:[#allocation8 + $0x1e0] sm:$0xff]  ;;  %v417_v33 = vld [vmem:[#allocation8 + $0x1f0] sm:$0xff]  ;;  %v590_v40 = vld [vmem:[#allocation10 + $0x8] sm:$0xff] }
  0xbd   : > { %975 = vmatpush1.bf16.msra.mxu1 %v974_v2  ;;  %945 = vmatprep.subr.bf16.mxu0 %v944_v3  ;;  %v954_v34 = vpack.c.bf16 %v415_v30, %v411_v29  ;;  %v352_v35 = vld [vmem:[%s1680_s16] sm:$0xff]  ;;  %v986_v37 = vpack.c.bf16 %v417_v33, %v413_v32  ;;  %v591_v43 = vld [vmem:[#allocation10 + $0x10] sm:$0xff]  ;;  %v592_v44 = vld [vmem:[#allocation10 + $0x18] sm:$0xff]  ;;  %vm587_vm1 = vcmp.eq.s32.totalorder %v586_v19, 48 }
  0xbe   : > { %977 = vmatprep.subr.bf16.mxu1 %v976_v7  ;;  %v354_v38 = vadd.f32 %v353_v36, %v352_v35  ;;  %v589_v39 = vld [vmem:[#allocation10] sm:$0xff]  ;;  %v992_v45 = vpack.c.bf16 %v592_v44, %v591_v43  ;;  %v594_v47 = vld [vmem:[#allocation10 + $0x28] sm:$0xff]  ;;  %v595_v49 = vld [vmem:[#allocation10 + $0x30] sm:$0xff] }
  0xbf   : > { %v989_v41 = vpack.c.bf16 %v590_v40, %v589_v39  ;;  %v593_v46 = vld [vmem:[#allocation10 + $0x20] sm:$0xff]  ;;  %v596_v50 = vld [vmem:[#allocation10 + $0x38] sm:$0xff]  ;;  %v598_v53 = vld [vmem:[#allocation10 + $0x48] sm:$0xff] }
  0xc0   : > { %947 = vmatpush1.bf16.msra.mxu0 %v946_v14  ;;  %v995_v48 = vpack.c.bf16 %v594_v47, %v593_v46  ;;  %v998_v51 = vpack.c.bf16 %v596_v50, %v595_v49  ;;  %v597_v52 = vld [vmem:[#allocation10 + $0x40] sm:$0xff]  ;;  %v599_v55 = vld [vmem:[#allocation10 + $0x50] sm:$0xff]  ;;  %v600_v56 = vld [vmem:[#allocation10 + $0x58] sm:$0xff] }
  0xc1   : > { %979 = vmatpush1.bf16.msra.mxu1 %v978_v15  ;;  %949 = vmatprep.subr.bf16.mxu0 %v948_v16  ;;  %v1001_v54 = vpack.c.bf16 %v598_v53, %v597_v52  ;;  %v1004_v57 = vpack.c.bf16 %v600_v56, %v599_v55  ;;  %v601_v58 = vld [vmem:[#allocation10 + $0x60] sm:$0xff]  ;;  %v602_v59 = vld [vmem:[#allocation10 + $0x68] sm:$0xff]  ;;  %v603_v61 = vld [vmem:[#allocation10 + $0x70] sm:$0xff] }
  0xc2   : > { %981 = vmatprep.subr.bf16.mxu1 %v980_v20  ;;  %v1007_v60 = vpack.c.bf16 %v602_v59, %v601_v58  ;;  %v604_v62 = vld [vmem:[#allocation10 + $0x78] sm:$0xff]  ;;  %v580_v15 = vld [vmem:[#allocation12] sm:$0xff] }
  0xc3   : > { %v1010_v63 = vpack.c.bf16 %v604_v62, %v603_v61 }
  0xc4   : > { %951 = vmatpush1.bf16.msra.mxu0 %v950_v26 }
  0xc5   : > { %983 = vmatpush1.bf16.msra.mxu1 %v982_v27  ;;  %953 = vmatprep.subr.bf16.mxu0 %v952_v28 }
  0xc6   : > { %985 = vmatprep.subr.bf16.mxu1 %v984_v31 }
  0xc8   : > { %955 = vmatpush1.bf16.msra.mxu0 %v954_v34 }
  0xc9   : > { %987 = vmatpush1.bf16.msra.mxu1 %v986_v37  ;;  %988 = vmatprep.subr.bf16.mxu0 %v1420_v42 }
  0xcb   : > { %484 = vmatmul.mubr.f32.vlgmr.msra.gmra.mrb[0].mxu0 %v354_v38 }
  0xcc   : > { %555 = vmatmul.mubr.f32.vlgmr.msra.gmra.mrb[0].mxu1 %v354_v38  ;;  %990 = vmatpush3.bf16.msra.mxu0 %v989_v41 }
  0xcd   : > { %991 = vmatprep.subr.bf16.mxu0 %v1420_v42  ;;  %921 = vmatprep.mubr.msk.f32.mxu0 %vm1421_vm0, %v1419_v9 }
  0xd0   : > { %993 = vmatpush3.bf16.msra.mxu0 %v992_v45 }
  0xd1   : > { %994 = vmatprep.subr.bf16.mxu0 %v1420_v42 }
  0xd4   : > { %996 = vmatpush3.bf16.msra.mxu0 %v995_v48 }
  0xd5   : > { %997 = vmatprep.subr.bf16.mxu0 %v1420_v42 }
  0xd8   : > { %999 = vmatpush3.bf16.msra.mxu0 %v998_v51 }
  0xd9   : > { %1000 = vmatprep.subr.bf16.mxu0 %v1420_v42 }
  0xdc   : > { %1002 = vmatpush3.bf16.msra.mxu0 %v1001_v54 }
  0xdd   : > { %1003 = vmatprep.subr.bf16.mxu0 %v1420_v42 }
  0xe0   : > { %1005 = vmatpush3.bf16.msra.mxu0 %v1004_v57 }
  0xe1   : > { %1006 = vmatprep.subr.bf16.mxu0 %v1420_v42 }
  0xe4   : > { %1008 = vmatpush3.bf16.msra.mxu0 %v1007_v60 }
  0xe5   : > { %1009 = vmatprep.subr.bf16.mxu0 %v1420_v42 }
  0xe8   : > { %1011 = vmatpush3.bf16.msra.mxu0 %v1010_v63 }
 0x19e   : > { %v485_v0 = vpop.f32.mrb[0].mxu0 }
 0x19f   : > { %v861_v1 = vmul.f32 -1.442695, %v485_v0  ;;  %v556_v2 = vpop.f32.mrb[0].mxu1  ;;  %v487_v3 = vpop.f32.mrb[1].mxu0 }
 0x1a0   : > { %v862_v4 = vmul.f32 -1.442695, %v556_v2  ;;  %v558_v9 = vpop.f32.mrb[1].mxu1 }
 0x1a1   : > { %1120 = vpow2.f32 %v861_v1  ;;  %v863_v5 = vmul.f32 -1.442695, %v558_v9 }
 0x1a2   : > { %1122 = vpow2.f32 %v862_v4 }
 0x1a3   : > { %1124 = vpow2.f32 %v863_v5 }
 0x1a4   : > { %1126 = vtanh.f32 %v487_v3 }
 0x1ab   : > { %v1121_v6 = vpop.eup %1120 }
 0x1ac   : > { %v1123_v7 = vpop.eup %1122  ;;  %v564_v8 = vadd.f32 1.0, %v1121_v6 }
 0x1ad   : > { %v1125_v10 = vpop.eup %1124  ;;  %v571_v11 = vadd.f32 1.0, %v1123_v7 }
 0x1ae   : > { %1128 = vrcp.f32 %v564_v8  ;;  %v577_v12 = vadd.f32 1.0, %v1125_v10  ;;  %v1127_v14 = vpop.eup %1126 }
 0x1af   : > { %1130 = vrcp.f32 %v571_v11 }
 0x1b0   : > { %1132 = vrcp.f32 %v577_v12 }
 0x1b8   : > { %v1129_v16 = vpop.eup %1128 }
 0x1b9   : > { %v1131_v17 = vpop.eup %1130  ;;  %v582_v18 = vmul.f32 %v1129_v16, %v1127_v14 }
 0x1ba   : > { %v581_v20 = vmul.f32 %v1131_v17, %v580_v15  ;;  %v1133_v22 = vpop.eup %1132 }
 0x1bc   : > { %v583_v21 = vadd.f32 %v582_v18, %v581_v20 }
 0x1be   : > { %v584_v23 = vmul.f32 %v1133_v22, %v583_v21  ;;  %677 = vst [vmem:[#allocation12] sm:$0xff] %v583_v21 }
 0x1c0   : > { %v588_v24 = vsel %vm587_vm1, 1.0, %v584_v23  ;;  %678 = vst [vmem:[#allocation14] sm:$0xff] %v584_v23 }
 0x1c1   : > { %922 = vmatmul.mubr.f32.vlgmr.msra.gmra.mrb[2].mxu0 %v588_v24 }
 0x1c2   : > { %1291 = shalt.err (!%p1288_p4)
}
 0x1c3   : > { %s1292_s28 = scalar_lea.hbm %s1797_s6, 128  ;;  %p1819_p13 = pmov %p1818_p11 }
 0x1c4   : > { %p1293_p10 = scmp.ne.s32.totalorder %s1797_s6, %s1292_s28  ;;  %p1298_p8 = scmp.lt.u32.totalorder %s1292_s28, %s1797_s6 }
 0x1c6   : > { %p1294_p0 = pnand %p1293_p10, %p1819_p13 }
 0x1c8   : > { %p1295_p2 = pneg %p1294_p0 }
 0x1ca   : > { %p1300_p9 = pnand %p1298_p8, %p1295_p2 }
 0x1cc   : > { %1303 = shalt.err (!%p1300_p9)
}
 0x1cd   : > { %p1820_p6 = pmov %p1818_p11  ;;  %s1423_s21 = smov [#allocation14]  }
 0x1ce   : > { %s715_s10 = sshll.u32 %s1423_s21, 4  ;;  %s716_s10 = int_to_ptr.vmem [resolvable:$true] %s715_s10 }
 0x1cf   : > { %1032 = dma.vmem_to_hbm [thread:$0]  (%p1820_p6), %s705_s19, 128, %s1797_s6, [#allocation13]  }
 0x1d0   : > { %s1304_s18 = scalar_lea.vmem %s716_s10, 128  ;;  %p1821_p12 = pmov %p1820_p6 }
 0x1d1   : > { %p1305_p11 = scmp.ne.s32.totalorder %s716_s10, %s1304_s18  ;;  %p1311_p3 = scmp.lt.s32.totalorder %s716_s10, %s716_s10 }
 0x1d2   : > { %p1312_p1 = scmp.lt.s32.totalorder %s1304_s18, %s1304_s18 }
 0x1d3   : > { %p1306_p5 = pnand %p1305_p11, %p1821_p12 }
 0x1d4   : > { %p1313_p4 = por %p1312_p1, %p1311_p3 }
 0x1d5   : > { %p1307_p7 = pneg %p1306_p5 }
 0x1d7   : > { %p1314_p10 = pnand %p1313_p4, %p1307_p7 }
 0x1d9   : > { %1317 = shalt.err (!%p1314_p10)
}
 0x1da   : > { %s1318_s17 = scalar_lea.hbm %s1798_s7, 128  ;;  %p1822_p0 = pmov %p1820_p6 }
 0x1db   : > { %p1319_p13 = scmp.ne.s32.totalorder %s1798_s7, %s1318_s17  ;;  %p1324_p9 = scmp.lt.u32.totalorder %s1318_s17, %s1798_s7 }
 0x1dd   : > { %p1320_p2 = pnand %p1319_p13, %p1822_p0 }
 0x1df   : > { %p1321_p8 = pneg %p1320_p2 }
 0x1e1   : > { %p1326_p6 = pnand %p1324_p9, %p1321_p8 }
 0x1e3   : > { %1329 = shalt.err (!%p1326_p6)
}
 0x1e4   : > { %p1823_p11 = pmov %p1822_p0  ;;  %s865_s21 = sshll.u32 %s1486_s30, 7 }
 0x1e5   : > { %s693_s18 = sshll.u32 %s1694_s8, 4  ;;  %s1743_s17 = scalar_lea.hbm %s1796_s5, %s865_s21  ;;  %s1745_s18 = int_to_ptr.vmem [resolvable:$true] %s693_s18 }
 0x1e6   : > { %1034 = dma.vmem_to_hbm [thread:$0]  (%p1823_p11), %s716_s10, 128, %s1798_s7, [#allocation13]  }
 0x1e7   : > { %s680_s14 = scalar_lea.sflag [#allocation4], %s1676_s22  ;;  %s1330_s19 = scalar_lea.vmem %s1745_s18, 128 }
 0x1e8   : > { %p1331_p12 = scmp.ne.s32.totalorder %s1745_s18, %s1330_s19  ;;  %p1824_p5 = scmp.ne.s32.totalorder %s1809_s9, 0 }
 0x1e9   : > { %s1424_s10 = smov [#allocation11]  }
 0x1ea   : > { %p1332_p7 = pnand %p1331_p12, %p1824_p5  ;;  %s1334_s15 = sshll.u32 %s1424_s10, 4  ;;  %s1335_s15 = int_to_ptr.vmem [resolvable:$false] %s1334_s15 }
 0x1eb   : > { %s1336_s13 = scalar_lea.vmem %s1335_s15, 256  ;;  %p1337_p1 = scmp.lt.s32.totalorder %s1745_s18, %s1335_s15 }
 0x1ec   : > { %p1333_p3 = pneg %p1332_p7  ;;  %p1338_p4 = scmp.lt.s32.totalorder %s1336_s13, %s1330_s19 }
 0x1ee   : > { %p1339_p10 = por %p1338_p4, %p1337_p1 }
 0x1f0   : > { %p1340_p13 = pnand %p1339_p10, %p1333_p3 }
 0x294   : > { %v671_v25 = vpop.f32.mrb[2].mxu0 }
 0x295   : > { %1134 = vtanh.f32 %v671_v25  ;;  %v923_v26 = vpop.f32.mrb[3].mxu0 }
 0x29f   : > { %v1135_v27 = vpop.eup %1134 }
 0x2a0   : > { %676 = vst [vmem:[%s1694_s8] sm:$0xff] %v1135_v27 }
 0x2a1   : > { %1343 = shalt.err (!%p1340_p13)
}
 0x2a2   : > { %s1344_s22 = scalar_lea.hbm %s1743_s17, 128  ;;  %s1348_s16 = scalar_lea.hbm %s1796_s5, 1024 }
 0x2a3   : > { %p1345_p0 = scmp.ne.s32.totalorder %s1743_s17, %s1344_s22  ;;  %p1349_p9 = scmp.lt.u32.totalorder %s1743_s17, %s1796_s5 }
 0x2a4   : > { %p1350_p6 = scmp.lt.u32.totalorder %s1348_s16, %s1344_s22  ;;  %p1352_p12 = scmp.lt.u32.totalorder %s1344_s22, %s1743_s17 }
 0x2a5   : > { %p1346_p2 = pnand %p1345_p0, %p1824_p5 }
 0x2a6   : > { %p1351_p11 = por %p1350_p6, %p1349_p9 }
 0x2a7   : > { %p1347_p8 = pneg %p1346_p2 }
 0x2a8   : > { %p1353_p7 = por %p1352_p12, %p1351_p11 }
 0x2aa   : > { %p1354_p3 = pnand %p1353_p7, %p1347_p8 }
 0x2ac   : > { %1357 = shalt.err (!%p1354_p3)
}
 0x2ad   : > { %1030 = dma.vmem_to_hbm [thread:$0]  (%p1824_p5), %s1745_s18, 128, %s1743_s17, %s680_s14  }
 0x2ae   : > { %p1825_p1 = scmp.eq.s32.totalorder %s1486_s30, 7 }
 0x2b0   : > { %1387 = dma.done.wait (%p1825_p1), [#allocation13], 256   ;;  %p1826_p4 = pmov %p1825_p1 }
 0x2b2   : > { %1389 = vsyncadd (%p1826_p4), [#allocation13], 4294967040 }
 0x2b3 PF: > { %p1074_p10 = scmp.ge.s32.totalorder %s1408_s27, 2  ;;  %s735_s28 = sand.u32 1, %s1396_s24  }
 0x2b4   : > { %p1827_p13 = scmp.ne.s32.totalorder %s1810_s12, 0  ;;  %s736_s19 = scalar_lea.sflag [#allocation4], %s735_s28 }
 0x2b6   : > { %p1058_p0 = pnand %p1074_p10, %p1827_p13 }
 0x2b8   : > { %1391 = dma.done.wait (!%p1058_p0), %s736_s19, 128  }
 0x2b9   : > { %1393 = vsyncadd (!%p1058_p0), %s736_s19, 4294967168  ;;  %p24_p5 = scmp.ge.s32.totalorder %s1598_s29, 10   ;;  %s1828_s24 = smov %s1400_s25 }
 0x2ba   : > { %s1829_s25 = smov %s1404_s26  ;;  %s1830_s26 = smov %s1609_s23 }
 0x2bb   : > { %s1831_s27 = smov %s1598_s29  ;;  %26 = sbr.rel (!%p24_p5) target bundleno = 8 (0x8), region = 121 }
 0x2c2   :  { %741 = vsyncpa [#allocation3], 1 }
 0x2c3   :  { %743 = vsyncpa [#allocation3 + $0x1], 1 }
 0x2c4   :  { %744 = vsyncpa [#allocation6], 1 }
 0x2c5   :  { %745 = vsyncpa [#allocation9], 1 }
 0x2c6   :  { %746 = vsyncpa [#allocation4], 1 }
 0x2c7   :  { %748 = vsyncpa [#allocation4 + $0x1], 1 }
 0x2c8   :  { %749 = vsyncpa [#allocation13], 1 }

</bundles_post_ra>
